<compile_context>
chip_gen: v6e
topology: v6e:2x2x1
jax: 0.10.0
libtpu: 0.0.40
codegen_flags: <defaults>
</compile_context>

<pallas_src>
import functools

import jax
import jax.numpy as jnp
from jax.experimental import pallas as pl
from jax.experimental.pallas import tpu as pltpu

NEG_SLOPE = 0.01  # F.leaky_relu default negative slope


def _leaky_relu(x):
    return jnp.where(x > 0, x, NEG_SLOPE * x)


def _fused_kernel(x_ref, w_ref, b_ref, o_ref, *, B, N, HHp, inv_heads, mxu_dtype):
    # x_ref: (B*N, D)      all node features, flattened over batch
    # w_ref: (D, 2*HHp)    [Wq_all | Wk_all], zero-padded to lane-dense width
    # b_ref: (1, 2*HHp)    [bq_all | bk_all], zero-padded
    # o_ref: (B, N, N)     relation matrices
    x = x_ref[...]
    w = w_ref[...]
    b = b_ref[...]

    # Single fused projection for Q and K of every head: (B*N, 2*HHp).
    qk = jnp.dot(x.astype(mxu_dtype), w.astype(mxu_dtype),
                 preferred_element_type=jnp.float32) + b
    qk = _leaky_relu(qk)                      # elementwise kept in f32 (v5e-safe)

    q = qk[:, :HHp].reshape(B, N, HHp)        # static, lane-aligned slices
    k = qk[:, HHp:].reshape(B, N, HHp)

    # sum_h Q_h K_h^T == Q_all K_all^T ; batched over B, contract last dims.
    rel = jnp.einsum("bnd,bmd->bnm",
                     q.astype(mxu_dtype), k.astype(mxu_dtype),
                     preferred_element_type=jnp.float32)      # (B, N, N)

    o_ref[...] = (rel * inv_heads).astype(o_ref.dtype)


def transformer_construction(x, wq, bq, wk, bk, *, mxu_dtype=jnp.float32):
    """Forward pass of the PyTorch module.

    x:  (B, N, D)   node features
    wq: (H, D, Hid) per-head Query weights (pre-transposed from nn.Linear)
    bq: (H, Hid)    per-head Query biases
    wk: (H, D, Hid) per-head Key weights (pre-transposed from nn.Linear)
    bk: (H, Hid)    per-head Key biases
    returns (B, N, N): mean over heads of leaky_relu(XWq+bq) @ leaky_relu(XWk+bk)^T
    """
    B, N, D = x.shape
    H, _, Hid = wq.shape
    HH = H * Hid
    HHp = max(128, ((HH + 127) // 128) * 128)      # pad to lane-dense multiple of 128
    pad = HHp - HH

    # Head-major fusion of per-head weights/biases along the feature axis.
    wq_all = jnp.transpose(wq, (1, 0, 2)).reshape(D, HH)
    wk_all = jnp.transpose(wk, (1, 0, 2)).reshape(D, HH)
    bq_all = bq.reshape(1, HH)
    bk_all = bk.reshape(1, HH)
    if pad:
        # Zero padding is exact: leaky_relu(0) = 0, so padded columns add nothing.
        wq_all = jnp.pad(wq_all, ((0, 0), (0, pad)))
        wk_all = jnp.pad(wk_all, ((0, 0), (0, pad)))
        bq_all = jnp.pad(bq_all, ((0, 0), (0, pad)))
        bk_all = jnp.pad(bk_all, ((0, 0), (0, pad)))

    # Single fused operand for the Q and K projections.
    w_both = jnp.concatenate([wq_all, wk_all], axis=1)   # (D, 2*HHp)
    b_both = jnp.concatenate([bq_all, bk_all], axis=1)   # (1, 2*HHp)

    x2d = x.reshape(B * N, D)

    itemsize = jnp.dtype(x.dtype).itemsize
    flops = 2 * (B * N) * D * (2 * HHp) + 2 * B * N * N * HHp
    bytes_accessed = (x2d.size + w_both.size + b_both.size + B * N * N) * itemsize
    cost = pl.CostEstimate(flops=flops, transcendentals=0,
                           bytes_accessed=bytes_accessed)

    kernel = functools.partial(
        _fused_kernel, B=B, N=N, HHp=HHp, inv_heads=1.0 / H, mxu_dtype=mxu_dtype)

    vmem = pl.BlockSpec(memory_space=pltpu.MemorySpace.VMEM)   # whole array in VMEM
    return pl.pallas_call(
        kernel,
        out_shape=jax.ShapeDtypeStruct((B, N, N), x.dtype),
        in_specs=[vmem, vmem, vmem],
        out_specs=vmem,
        cost_estimate=cost,
    )(x2d, w_both, b_both)


def reference(x, wq, bq, wk, bk):
    # Pure-JAX replica of the PyTorch forward (per-head, then mean over heads).
    H = wq.shape[0]
    outs = []
    for i in range(H):
        q = _leaky_relu(x @ wq[i] + bq[i])
        k = _leaky_relu(x @ wk[i] + bk[i])
        outs.append(jnp.einsum("bnd,bmd->bnm", q, k))
    return jnp.mean(jnp.stack(outs, axis=1), axis=1)


if __name__ == "__main__":
    # Small shapes consistent with the module: batch=2, nodes(seq)=8,
    # input_dimension=16, hidden_dimension=32, num_heads=3.
    B, N, D, Hid, H = 2, 8, 16, 32, 3
    key = jax.random.PRNGKey(0)
    kx, kwq, kbq, kwk, kbk = jax.random.split(key, 5)

    x = jax.random.normal(kx, (B, N, D), dtype=jnp.float32)
    # nn.Linear weights are (Hid, D); stored pre-transposed here as (H, D, Hid).
    wq = jax.random.normal(kwq, (H, D, Hid), dtype=jnp.float32) * 0.1
    bq = jax.random.normal(kbq, (H, Hid), dtype=jnp.float32) * 0.1
    wk = jax.random.normal(kwk, (H, D, Hid), dtype=jnp.float32) * 0.1
    bk = jax.random.normal(kbk, (H, Hid), dtype=jnp.float32) * 0.1

    out = transformer_construction(x, wq, bq, wk, bk)
    out = jax.block_until_ready(out)

    ref = reference(x, wq, bq, wk, bk)
    assert out.shape == (B, N, N)
    assert jnp.allclose(out, ref, atol=1e-4, rtol=1e-4), float(jnp.max(jnp.abs(out - ref)))
    print("KERNEL_OK")
</pallas_src>

<mosaic_0001>
module attributes {stable_mosaic.version = 11 : i64} {
  func.func @_fused_kernel(%arg0: memref<16x16xf32, #tpu.memory_space<vmem>>, %arg1: memref<16x256xf32, #tpu.memory_space<vmem>>, %arg2: memref<1x256xf32, #tpu.memory_space<vmem>>, %arg3: memref<2x8x8xf32, #tpu.memory_space<vmem>>) attributes {dimension_semantics = [], scalar_prefetch = 0 : i64, scratch_operands = 0 : i64, tpu.core_type = #tpu.core_type<tc>} {
    %c0 = arith.constant 0 : index
    %c0_0 = arith.constant 0 : index
    %0 = vector.load %arg0[%c0, %c0_0] : memref<16x16xf32, #tpu.memory_space<vmem>>, vector<16x16xf32>
    %c0_1 = arith.constant 0 : index
    %c0_2 = arith.constant 0 : index
    %1 = vector.load %arg1[%c0_1, %c0_2] : memref<16x256xf32, #tpu.memory_space<vmem>>, vector<16x256xf32>
    %c0_3 = arith.constant 0 : index
    %c0_4 = arith.constant 0 : index
    %2 = vector.load %arg2[%c0_3, %c0_4] : memref<1x256xf32, #tpu.memory_space<vmem>>, vector<1x256xf32>
    %cst = arith.constant dense<0.000000e+00> : vector<16x256xf32>
    %3 = tpu.matmul %0, %1, %cst {dimension_numbers = #tpu.dot_dimension_numbers<[1], [0], [0], [1], [0, 0, 1, 1], [], []>} : vector<16x16xf32>, vector<16x256xf32>, vector<16x256xf32> -> vector<16x256xf32>
    %4 = vector.broadcast %2 : vector<1x256xf32> to vector<16x256xf32>
    %5 = arith.addf %3, %4 : vector<16x256xf32>
    %cst_5 = arith.constant 0.000000e+00 : f32
    %6 = vector.broadcast %cst_5 : f32 to vector<16x256xf32>
    %7 = arith.cmpf ogt, %5, %6 : vector<16x256xf32>
    %cst_6 = arith.constant 0.00999999977 : f32
    %8 = vector.broadcast %cst_6 : f32 to vector<16x256xf32>
    %9 = arith.mulf %8, %5 : vector<16x256xf32>
    %10 = arith.select %7, %5, %9 : vector<16x256xi1>, vector<16x256xf32>
    %11 = vector.extract_strided_slice %10 {offsets = [0, 0], sizes = [16, 128], strides = [1, 1]} : vector<16x256xf32> to vector<16x128xf32>
    %12 = vector.shape_cast %11 : vector<16x128xf32> to vector<2x8x128xf32>
    %13 = vector.extract_strided_slice %10 {offsets = [0, 128], sizes = [16, 128], strides = [1, 1]} : vector<16x256xf32> to vector<16x128xf32>
    %14 = vector.shape_cast %13 : vector<16x128xf32> to vector<2x8x128xf32>
    "tpu.trace_start"() <{level = 10 : i32, message = "bnd,bmd->bnm"}> : () -> ()
    %cst_7 = arith.constant dense<0.000000e+00> : vector<2x8x8xf32>
    %15 = tpu.matmul %12, %14, %cst_7 {dimension_numbers = #tpu.dot_dimension_numbers<[2], [2], [1], [1], [0, 0, 0, 1, 1, 1], [0], [0]>} : vector<2x8x128xf32>, vector<2x8x128xf32>, vector<2x8x8xf32> -> vector<2x8x8xf32>
    "tpu.trace_stop"() : () -> ()
    %cst_8 = arith.constant 0.333333343 : f32
    %16 = vector.broadcast %cst_8 : f32 to vector<2x8x8xf32>
    %17 = arith.mulf %15, %16 : vector<2x8x8xf32>
    %c0_9 = arith.constant 0 : index
    %c0_10 = arith.constant 0 : index
    %c0_11 = arith.constant 0 : index
    %18 = vector.load %arg3[%c0_9, %c0_10, %c0_11] : memref<2x8x8xf32, #tpu.memory_space<vmem>>, vector<2x8x8xf32>
    tpu.vector_store %arg3[%c0_9, %c0_10, %c0_11], %17 {strides = array<i32>} : memref<2x8x8xf32, #tpu.memory_space<vmem>>, vector<2x8x8xf32>,
    return
  }
}

</mosaic_0001>

<bundles_post_ra>
// kernel: tpu_custom_call.1
= control target key start
LH: loop header
LB: loop body
LE: loop exit
PB: predicated region body
PF: predicated region fallthrough
CT: control target
= control target key end

     0   :  { %8 = vsyncpa [#allocation3], 0  ;;  %s460_s0 = inlined_call_operand.hbm [shape: f32[16,16], index: 0, kind: input, shape index: {}]   ;;  %s461_s1 = inlined_call_operand.hbm [shape: f32[16,256], index: 1, kind: input, shape index: {}]   ;;  %s462_s2 = inlined_call_operand.vmem [shape: f32[1,256], index: 2, kind: input, shape index: {}]   ;;  %s463_s3 = inlined_call_operand.hbm [shape: f32[2,8,8], index: 3, kind: output, shape index: {}]  }
   0x1   :  { %9 = vsyncpa [#allocation6], 0 }
   0x2   :  { %10 = vsyncpa [#allocation4], 0  ;;  %s411_s12 = smov [#allocation2]  }
   0x3   :  { %s16_s13 = sshll.u32 %s411_s12, 4  ;;  %s17_s13 = int_to_ptr.vmem [resolvable:$true] %s16_s13 }
   0x4   :  { %s353_s14 = scalar_lea.vmem %s17_s13, 256  ;;  %p358_p1 = scmp.lt.s32.totalorder %s17_s13, %s17_s13 }
   0x5   :  { %p354_p0 = scmp.ne.s32.totalorder %s17_s13, %s353_s14  ;;  %p359_p2 = scmp.lt.s32.totalorder %s353_s14, %s353_s14 }
   0x7   :  { %p360_p3 = por %p359_p2, %p358_p1 }
   0x9   :  { %p361_p4 = pnand %p360_p3, %p354_p0 }
   0xb   :  { %364 = shalt.err (!%p361_p4)
}
   0xc   :  { %s412_s15 = smov 128   ;;  %s413_s16 = smov 8  }
   0xd   :  { %22 = dma.hbm_to_vmem [thread:$0]  %s460_s0, 256, %s17_s13, [#allocation3], %s412_s15, %s412_s15, %s413_s16  }
   0xe   :  { %s414_s19 = smov [#allocation5]  }
   0xf   :  { %s28_s20 = sshll.u32 %s414_s19, 4  ;;  %s29_s20 = int_to_ptr.vmem [resolvable:$true] %s28_s20 }
  0x10   :  { %s373_s21 = scalar_lea.vmem %s29_s20, 512  ;;  %p378_p6 = scmp.lt.s32.totalorder %s29_s20, %s29_s20 }
  0x11   :  { %p374_p5 = scmp.ne.s32.totalorder %s29_s20, %s373_s21  ;;  %p379_p7 = scmp.lt.s32.totalorder %s373_s21, %s373_s21 }
  0x13   :  { %p380_p8 = por %p379_p7, %p378_p6 }
  0x15   :  { %p381_p9 = pnand %p380_p8, %p374_p5 }
  0x17   :  { %384 = shalt.err (!%p381_p9)
}
  0x18   :  { %s415_s22 = smov 256   ;;  %s416_s23 = smov 16  }
  0x19   :  { %34 = dma.hbm_to_vmem [thread:$0]  %s461_s1, 512, %s29_s20, [#allocation6], %s415_s22, %s415_s22, %s416_s23  }
  0x1a   :  { %405 = dma.done.wait [#allocation3], 256  }
  0x1b   :  { %406 = vsyncadd [#allocation3], 4294967040 }
  0x1c   :  { %407 = dma.done.wait [#allocation6], 512  }
  0x1d   :  { %408 = vsyncadd [#allocation6], 4294966784  ;;  %v417_v0 = vmov 0.0   ;;  %v48_v1 = vld [vmem:[#allocation5 + $0x18] sm:$0xff]  ;;  %v47_v2 = vld [vmem:[#allocation5 + $0x10] sm:$0xff]  ;;  %vm61_vm0 = vcmask 130048   ;;  %v51_v7 = vlaneseq }
  0x1e   :  { %132 = vmatprep.mubr.f32.mxu0 %v417_v0  ;;  %326 = vmatprep.subr.mxu1 %v417_v0  ;;  %v46_v3 = vld [vmem:[#allocation5 + $0x8] sm:$0xff]  ;;  %v45_v4 = vld [vmem:[#allocation5] sm:$0xff]  ;;  %v43_v5 = vld [vmem:[#allocation2] sm:$0xff]  ;;  %vm418_vm1 = vmmov 0   ;;  %vm299_vm6 = vcmask 64512  }
  0x1f   :  { %96 = vmatprep.subr.mxu0 %v48_v1  ;;  %v44_v6 = vld [vmem:[#allocation2 + $0x8] sm:$0xff]  ;;  %328 = vmatprep.mubr.msk.f32.mxu1 %vm418_vm1, %v417_v0  ;;  %v52_v8 = vshrl.u32 %v51_v7, 7  ;;  %v49_v10 = vld [vmem:[%s462_s2] sm:$0x3]  ;;  %s419_s2 = smov [#allocation7]  }
  0x20   :  { %97 = vmatpush1.msra.mxu0 %v47_v2  ;;  %s307_s26 = sshll.u32 %s419_s2, 4  ;;  %s308_s26 = int_to_ptr.vmem [resolvable:$true] %s307_s26 }
  0x21   :  { %98 = vmatprep.subr.mxu0 %v46_v3  ;;  %v53_v9 = vsub.s32 0, %v52_v8  ;;  %v57_v11 = vsub.s32 1, %v52_v8  ;;  %s385_s27 = scalar_lea.vmem %s308_s26, 256  ;;  %p390_p11 = scmp.lt.s32.totalorder %s308_s26, %s308_s26 }
  0x22   :  { %99 = vmatpush1.msra.mxu0 %v45_v4  ;;  %p386_p10 = scmp.ne.s32.totalorder %s308_s26, %s385_s27  ;;  %p391_p12 = scmp.lt.s32.totalorder %s385_s27, %s385_s27 }
  0x23   :  { %320 = vmatmul.mubr.msk.f32.vlgmr.msra.gmra.mxu0 %vm61_vm0, %v43_v5  ;;  %v54_v12 = vrot.slane %v49_v10, %v53_v9  ;;  %v58_v13 = vrot.slane %v49_v10, %v57_v11 }
  0x24   :  { %138 = vmatprep.mubr.f32.mxu0 %v417_v0  ;;  %p392_p13 = por %p391_p12, %p390_p11 }
  0x26   :  { %p393_p0 = pnand %p392_p13, %p386_p10 }
  0x27   :  { %321 = vmatmul.mubr.msk.f32.gmra.mxu0 %vm61_vm0, %v44_v6 }
  0xe3   :  { %v134_v14 = vpop.f32.mrf.mxu0 }
  0xe4   :  { %v135_v15 = vadd.f32 %v134_v14, %v54_v12 }
  0xe5   :  { %v136_v16 = vpop.f32.mrf.mxu0 }
  0xe6   :  { %v137_v17 = vadd.f32 %v136_v16, %v58_v13  ;;  %v149_v20 = vmul.f32 0.01, %v135_v15  ;;  %vm145_vm3 = vcmp.gt.f32.partialorder %v135_v15, 0.0 }
  0xe7   :  { %v140_v18 = vpop.f32.mrf.mxu0 }
  0xe8   :  { %vm146_vm2 = vcmp.gt.f32.partialorder %v137_v17, 0.0  ;;  %v150_v19 = vmul.f32 0.01, %v137_v17  ;;  %v141_v21 = vadd.f32 %v140_v18, %v54_v12  ;;  %v153_v27 = vsel %vm145_vm3, %v135_v15, %v149_v20 }
  0xe9   :  { %v142_v22 = vpop.f32.mrf.mxu0 }
  0xea   :  { %v143_v23 = vadd.f32 %v142_v22, %v58_v13  ;;  %v154_v24 = vsel %vm146_vm2, %v137_v17, %v150_v19  ;;  %v151_v26 = vmul.f32 0.01, %v141_v21  ;;  %vm147_vm5 = vcmp.gt.f32.partialorder %v141_v21, 0.0 }
  0xeb   :  { %327 = vmatpush3.xpose.msra.mxu1 %v154_v24 }
  0xec   :  { %vm148_vm4 = vcmp.gt.f32.partialorder %v143_v23, 0.0  ;;  %v152_v25 = vmul.f32 0.01, %v143_v23  ;;  %331 = vmatprep.subr.mxu1 %v417_v0  ;;  %v155_v29 = vsel %vm147_vm5, %v141_v21, %v151_v26 }
  0xee   :  { %329 = vmatmul.mubr.f32.vlgmr.msra.gmra.mxu1 %v153_v27  ;;  %v156_v28 = vsel %vm148_vm4, %v143_v23, %v152_v25 }
  0xef   :  { %332 = vmatpush3.xpose.msra.mxu1 %v156_v28  ;;  %333 = vmatprep.mubr.msk.f32.mxu1 %vm418_vm1, %v417_v0 }
  0xf2   :  { %334 = vmatmul.mubr.f32.vlgmr.msra.gmra.mxu1 %v155_v29 }
 0x1ae   :  { %v223_v30 = vpop.f32.mrf.mxu1 }
 0x1af   :  { %v297_v31 = vmul.f32 0.33333334, %v223_v30 }
 0x1b0   :  { %v330_v32 = vpop.f32.mrf.mxu1 }
 0x1b1   :  { %300 = vst.msk [vmem:[#allocation7] sm:$0xff] %vm299_vm6, %v297_v31 }
 0x1b2   :  { %v293_v33 = vpop.f32.mrf.mxu1 }
 0x1b3   :  { %v298_v34 = vmul.f32 0.33333334, %v293_v33 }
 0x1b4   :  { %v335_v35 = vpop.f32.mrf.mxu1 }
 0x1b5   :  { %301 = vst.msk [vmem:[#allocation7 + $0x8] sm:$0xff] %vm299_vm6, %v298_v34 }
 0x1b6   :  { %396 = shalt.err (!%p393_p0)
}
 0x1b7   :  { %313 = dma.vmem_to_hbm [thread:$0]  %s308_s26, 256, %s463_s3, [#allocation4], %s412_s15, %s412_s15, %s413_s16  }
 0x1b8   :  { %409 = dma.done.wait [#allocation4], 256  }
 0x1b9   :  { %410 = vsyncadd [#allocation4], 4294967040 }
 0x1ba   :  { %317 = vsyncpa [#allocation3], 1 }
 0x1bb   :  { %318 = vsyncpa [#allocation6], 1 }
 0x1bc   :  { %319 = vsyncpa [#allocation4], 1 }

</bundles_post_ra>
